<compile_context>
chip_gen: v6e
topology: v6e:2x2x1
jax: 0.10.0
libtpu: 0.0.40
codegen_flags: <defaults>
</compile_context>

<pallas_src>
import functools

import jax
import jax.numpy as jnp
import numpy as np
from jax import lax
from jax.experimental import pallas as pl
from jax.experimental.pallas import tpu as pltpu

_LANE = 128
_SUBLANE = 8
_MAX_TR = 64                      # rows/block cap: keeps accumulators in vregs
_MAX_TS = 8192                    # lanes/block cap: 64x8192 f32 = 2 MiB block
_VMEM_LIMIT = 32 * 1024 * 1024    # safe on every generation (>= 64 MiB VMEM)


# ----------------------------- kernels --------------------------------------


def _stats_kernel(x_ref, sum_ref, sq_ref, *, total_s, block_s):
    """Lane-parallel partial sum / sum-of-squares per row.

    Outputs are (tR, 128) accumulators, VMEM-resident across the spatial grid
    axis (same out block index for every s).  Per 128-lane chunk we only do
    elementwise VPU adds; the ragged S tail (if any) is masked in-kernel so the
    wrapper never pads x.
    """
    s = pl.program_id(1)

    @pl.when(s == 0)
    def _():
        sum_ref[...] = jnp.zeros_like(sum_ref)
        sq_ref[...] = jnp.zeros_like(sq_ref)

    t_r = sum_ref.shape[0]
    n_chunks = block_s // _LANE
    ragged = (total_s % block_s) != 0          # static Python flag

    ps = jnp.zeros((t_r, _LANE), jnp.float32)  # 2*tR/8 <= 16 vregs carried
    pq = jnp.zeros((t_r, _LANE), jnp.float32)
    if ragged:
        col0 = s * block_s
        lane = lax.broadcasted_iota(jnp.int32, (t_r, _LANE), 1)
    for i in range(n_chunks):                  # static, lane-tile aligned refs
        c = x_ref[:, i * _LANE:(i + 1) * _LANE].astype(jnp.float32)
        if ragged:
            c = jnp.where(col0 + (i * _LANE) + lane < total_s, c, 0.0)
        ps = ps + c
        pq = pq + c * c
    sum_ref[...] += ps
    sq_ref[...] += pq


def _norm_kernel(x_ref, scale_ref, shift_ref, o_ref):
    """y = x * scale[row] + shift[row].

    scale/shift arrive lane-replicated as (tR, 128); with tR <= 64 they occupy
    at most 16 vregs, so holding them across the unrolled chunk loop is safe.
    OOB rows/lanes of edge blocks are written but dropped by the output DMA.
    """
    scale = scale_ref[...]                     # (tR, 128) f32
    shift = shift_ref[...]                     # (tR, 128) f32
    n_chunks = x_ref.shape[1] // _LANE
    for i in range(n_chunks):
        sl = slice(i * _LANE, (i + 1) * _LANE)
        xc = x_ref[:, sl].astype(jnp.float32)
        o_ref[:, sl] = (xc * scale + shift).astype(o_ref.dtype)


# ----------------------------- tiling ----------------------------------------


def _round_up(a, b):
    return -(-a // b) * b


def _choose_tiles(R, S):
    """Pick (tR, tS): (8,128)-aligned block shape; grid uses cdiv (ragged ok)."""
    tS = min(_round_up(S, _LANE), _MAX_TS)     # multiple of 128, never 128-only
    r8 = _round_up(R, _SUBLANE)
    tR = min(_MAX_TR, r8)
    if r8 >= 2 * _SUBLANE:
        # keep >= 2 row blocks so both v7x TensorCores work on the stats pass
        half = max(_SUBLANE, (r8 // 2) // _SUBLANE * _SUBLANE)
        tR = min(tR, half)
    return tR, tS


# ----------------------------- wrapper ---------------------------------------


@functools.partial(jax.jit, static_argnames=("eps", "momentum"))
def switch_norm_3d(x, weight, bias, mean_weight, var_weight,
                   running_mean, running_var, eps=1e-5, momentum=0.997):
    """Forward of SwitchNorm3d (training mode).

    x:            (N, C, D, H, W)
    weight, bias: (1, C, 1, 1, 1)
    mean_weight, var_weight: (3,)
    running_mean, running_var: (1, C, 1)  (returned updated, moving average)
    """
    N, C, D, H, W = x.shape
    S = D * H * W
    R = N * C

    tR, tS = _choose_tiles(R, S)
    n_r = pl.cdiv(R, tR)
    n_s = pl.cdiv(S, tS)

    x2 = x.reshape(R, S)   # no padding / no output slicing: ragged edges
                           # handled by Pallas edge blocks + in-kernel mask

    cp_stats = pltpu.CompilerParams(
        dimension_semantics=("parallel", "arbitrary"),
        vmem_limit_bytes=_VMEM_LIMIT)
    cp_norm = pltpu.CompilerParams(
        dimension_semantics=("parallel", "parallel"),
        vmem_limit_bytes=_VMEM_LIMIT)

    # ---- kernel 1: per-row lane-parallel reduction over the spatial axis ----
    psum, psq = pl.pallas_call(
        functools.partial(_stats_kernel, total_s=S, block_s=tS),
        out_shape=(jax.ShapeDtypeStruct((R, _LANE), jnp.float32),
                   jax.ShapeDtypeStruct((R, _LANE), jnp.float32)),
        grid_spec=pltpu.PrefetchScalarGridSpec(
            num_scalar_prefetch=0,
            grid=(n_r, n_s),
            in_specs=[pl.BlockSpec((tR, tS), lambda r, s: (r, s))],
            out_specs=(pl.BlockSpec((tR, _LANE), lambda r, s: (r, 0)),
                       pl.BlockSpec((tR, _LANE), lambda r, s: (r, 0))),
        ),
        compiler_params=cp_stats,
    )(x2)

    # ---- tiny (N, C) statistics combination: plain JAX glue ----
    sums = jnp.sum(psum, axis=1).reshape(N, C)
    sqs = jnp.sum(psq, axis=1).reshape(N, C)

    Sf = jnp.float32(S)
    mean_in = sums / Sf                                            # (N, C)
    # torch.var default is unbiased (correction=1); guard the S == 1 edge case
    denom = jnp.float32(max(S - 1, 1))
    var_in = jnp.maximum(sqs - Sf * mean_in * mean_in, 0.0) / denom

    mean_ln = jnp.mean(mean_in, axis=1, keepdims=True)             # (N, 1)
    temp = var_in + mean_in ** 2                                   # (N, C)
    var_ln = jnp.mean(temp, axis=1, keepdims=True) - mean_ln ** 2  # (N, 1)

    mean_bn = jnp.mean(mean_in, axis=0, keepdims=True)             # (1, C)
    var_bn = jnp.mean(temp, axis=0, keepdims=True) - mean_bn ** 2  # (1, C)

    # moving-average buffer update (returned; caller carries the state)
    rm = running_mean.reshape(1, C)
    rv = running_var.reshape(1, C)
    new_running_mean = (momentum * rm + (1.0 - momentum) * mean_bn).reshape(1, C, 1)
    new_running_var = (momentum * rv + (1.0 - momentum) * var_bn).reshape(1, C, 1)

    mw = jax.nn.softmax(mean_weight)
    vw = jax.nn.softmax(var_weight)

    mean = mw[0] * mean_in + mw[1] * mean_ln + mw[2] * mean_bn     # (N, C)
    var = vw[0] * var_in + vw[1] * var_ln + vw[2] * var_bn         # (N, C)
    var = jnp.maximum(var, 0.0)        # cancellation guard before the rsqrt

    gamma = weight.reshape(1, C)
    beta = bias.reshape(1, C)
    inv_std = 1.0 / jnp.sqrt(var + eps)                            # (N, C)
    scale = (gamma * inv_std).reshape(R)                           # (R,)
    shift = (beta - mean * gamma * inv_std).reshape(R)             # (R,)

    # lane-replicated (R, 128) so the normalize kernel needs no per-step lane
    # splat; these stay VMEM-resident across the spatial grid axis.
    scale_b = jnp.broadcast_to(scale[:, None], (R, _LANE)).astype(jnp.float32)
    shift_b = jnp.broadcast_to(shift[:, None], (R, _LANE)).astype(jnp.float32)

    # ---- kernel 2: fused normalize + affine over the full tensor ----
    y2 = pl.pallas_call(
        _norm_kernel,
        out_shape=jax.ShapeDtypeStruct((R, S), x.dtype),
        grid_spec=pltpu.PrefetchScalarGridSpec(
            num_scalar_prefetch=0,
            grid=(n_r, n_s),
            in_specs=[pl.BlockSpec((tR, tS), lambda r, s: (r, s)),
                      pl.BlockSpec((tR, _LANE), lambda r, s: (r, 0)),
                      pl.BlockSpec((tR, _LANE), lambda r, s: (r, 0))],
            out_specs=pl.BlockSpec((tR, tS), lambda r, s: (r, s)),
        ),
        compiler_params=cp_norm,
    )(x2, scale_b, shift_b)

    y = y2.reshape(N, C, D, H, W)
    return y, new_running_mean, new_running_var


# ----------------------------- reference -------------------------------------


def _reference(x, weight, bias, mean_weight, var_weight, eps=1e-5):
    N, C, D, H, W = x.shape
    xr = x.reshape(N, C, -1).astype(jnp.float32)
    mean_in = jnp.mean(xr, -1, keepdims=True)
    var_in = jnp.var(xr, -1, keepdims=True, ddof=1)
    mean_ln = jnp.mean(mean_in, 1, keepdims=True)
    temp = var_in + mean_in ** 2
    var_ln = jnp.mean(temp, 1, keepdims=True) - mean_ln ** 2
    mean_bn = jnp.mean(mean_in, 0, keepdims=True)
    var_bn = jnp.mean(temp, 0, keepdims=True) - mean_bn ** 2
    mw = jax.nn.softmax(mean_weight)
    vw = jax.nn.softmax(var_weight)
    mean = mw[0] * mean_in + mw[1] * mean_ln + mw[2] * mean_bn
    var = vw[0] * var_in + vw[1] * var_ln + vw[2] * var_bn
    xn = (xr - mean) / jnp.sqrt(var + eps)
    xn = xn.reshape(N, C, D, H, W)
    return xn * weight + bias


def _run_case(key, N, C, D, H, W):
    x = jax.random.normal(key, (N, C, D, H, W), dtype=jnp.float32)
    # deterministic parameter init, matching SwitchNorm3d.reset_parameters()
    weight = jnp.ones((1, C, 1, 1, 1), jnp.float32)        # last_gamma=False
    bias = jnp.zeros((1, C, 1, 1, 1), jnp.float32)
    mean_weight = jnp.ones((3,), jnp.float32)
    var_weight = jnp.ones((3,), jnp.float32)
    running_mean = jnp.zeros((1, C, 1), jnp.float32)
    running_var = jnp.zeros((1, C, 1), jnp.float32)

    y, new_rm, new_rv = switch_norm_3d(
        x, weight, bias, mean_weight, var_weight, running_mean, running_var)
    y = jax.block_until_ready(y)

    y_ref = _reference(x, weight, bias, mean_weight, var_weight)
    np.testing.assert_allclose(np.asarray(y), np.asarray(y_ref),
                               rtol=1e-4, atol=1e-4)


# ----------------------------- main -------------------------------------------


if __name__ == "__main__":
    key = jax.random.PRNGKey(0)
    k1, k2 = jax.random.split(key)

    # aligned shapes: R = 8, S = 256
    _run_case(k1, N=2, C=4, D=4, H=8, W=8)
    # ragged shapes (exercise in-kernel tail masking, no XLA pad/slice):
    # R = 6 (not a multiple of 8), S = 105 (not a multiple of 128)
    _run_case(k2, N=2, C=3, D=3, H=5, W=7)

    print("KERNEL_OK")
</pallas_src>

<mosaic_0001>
module attributes {stable_mosaic.version = 11 : i64} {
  func.func @_stats_kernel(%arg0: i32, %arg1: i32, %arg2: memref<8x256xf32, #tpu.memory_space<vmem>>, %arg3: memref<8x128xf32, #tpu.memory_space<vmem>>, %arg4: memref<8x128xf32, #tpu.memory_space<vmem>>) attributes {dimension_semantics = [#tpu.dimension_semantics<parallel>, #tpu.dimension_semantics<arbitrary>], iteration_bounds = array<i64: 1, 1>, scalar_prefetch = 0 : i64, scratch_operands = 0 : i64, tpu.core_type = #tpu.core_type<tc>, window_params = [{transform_indices = @transform_0, window_bounds = array<i64: 8, 256>}, {transform_indices = @transform_1, window_bounds = array<i64: 8, 128>}, {transform_indices = @transform_2, window_bounds = array<i64: 8, 128>}]} {
    %c0_i32 = arith.constant 0 : i32
    %0 = arith.cmpi eq, %arg1, %c0_i32 : i32
    %1 = arith.extui %0 : i1 to i32
    %c0_i32_0 = arith.constant 0 : i32
    %2 = arith.cmpi ne, %1, %c0_i32_0 : i32
    scf.if %2 {
      %cst_12 = arith.constant 0.000000e+00 : f32
      %19 = vector.broadcast %cst_12 : f32 to vector<8x128xf32>
      %c0_13 = arith.constant 0 : index
      %c0_14 = arith.constant 0 : index
      %20 = vector.load %arg3[%c0_13, %c0_14] : memref<8x128xf32, #tpu.memory_space<vmem>>, vector<8x128xf32>
      tpu.vector_store %arg3[%c0_13, %c0_14], %19 {strides = array<i32>} : memref<8x128xf32, #tpu.memory_space<vmem>>, vector<8x128xf32>,
      %cst_15 = arith.constant 0.000000e+00 : f32
      %21 = vector.broadcast %cst_15 : f32 to vector<8x128xf32>
      %c0_16 = arith.constant 0 : index
      %c0_17 = arith.constant 0 : index
      %22 = vector.load %arg4[%c0_16, %c0_17] : memref<8x128xf32, #tpu.memory_space<vmem>>, vector<8x128xf32>
      tpu.vector_store %arg4[%c0_16, %c0_17], %21 {strides = array<i32>} : memref<8x128xf32, #tpu.memory_space<vmem>>, vector<8x128xf32>,
    } else {
    }
    %cst = arith.constant 0.000000e+00 : f32
    %3 = vector.broadcast %cst : f32 to vector<8x128xf32>
    %cst_1 = arith.constant 0.000000e+00 : f32
    %4 = vector.broadcast %cst_1 : f32 to vector<8x128xf32>
    %c0 = arith.constant 0 : index
    %c0_2 = arith.constant 0 : index
    %5 = vector.load %arg2[%c0, %c0_2] : memref<8x256xf32, #tpu.memory_space<vmem>>, vector<8x128xf32>
    %6 = arith.addf %3, %5 : vector<8x128xf32>
    %7 = arith.mulf %5, %5 : vector<8x128xf32>
    %8 = arith.addf %4, %7 : vector<8x128xf32>
    %c0_3 = arith.constant 0 : index
    %c128 = arith.constant 128 : index
    %9 = vector.load %arg2[%c0_3, %c128] : memref<8x256xf32, #tpu.memory_space<vmem>>, vector<8x128xf32>
    %10 = arith.addf %6, %9 : vector<8x128xf32>
    %11 = arith.mulf %9, %9 : vector<8x128xf32>
    %12 = arith.addf %8, %11 : vector<8x128xf32>
    %c0_4 = arith.constant 0 : index
    %c0_5 = arith.constant 0 : index
    %13 = vector.load %arg3[%c0_4, %c0_5] : memref<8x128xf32, #tpu.memory_space<vmem>>, vector<8x128xf32>
    %14 = arith.addf %13, %10 : vector<8x128xf32>
    %c0_6 = arith.constant 0 : index
    %c0_7 = arith.constant 0 : index
    %15 = vector.load %arg3[%c0_6, %c0_7] : memref<8x128xf32, #tpu.memory_space<vmem>>, vector<8x128xf32>
    tpu.vector_store %arg3[%c0_6, %c0_7], %14 {strides = array<i32>} : memref<8x128xf32, #tpu.memory_space<vmem>>, vector<8x128xf32>,
    %c0_8 = arith.constant 0 : index
    %c0_9 = arith.constant 0 : index
    %16 = vector.load %arg4[%c0_8, %c0_9] : memref<8x128xf32, #tpu.memory_space<vmem>>, vector<8x128xf32>
    %17 = arith.addf %16, %12 : vector<8x128xf32>
    %c0_10 = arith.constant 0 : index
    %c0_11 = arith.constant 0 : index
    %18 = vector.load %arg4[%c0_10, %c0_11] : memref<8x128xf32, #tpu.memory_space<vmem>>, vector<8x128xf32>
    tpu.vector_store %arg4[%c0_10, %c0_11], %17 {strides = array<i32>} : memref<8x128xf32, #tpu.memory_space<vmem>>, vector<8x128xf32>,
    return
  }
  func.func @transform_0(%arg0: i32, %arg1: i32) -> (i32, i32) {
    %c0_i32 = arith.constant 0 : i32
    return %arg0, %arg1 : i32, i32
  }
  func.func @transform_1(%arg0: i32, %arg1: i32) -> (i32, i32) {
    %c0_i32 = arith.constant 0 : i32
    %c0_i32_0 = arith.constant 0 : i32
    return %arg0, %c0_i32 : i32, i32
  }
  func.func @transform_2(%arg0: i32, %arg1: i32) -> (i32, i32) {
    %c0_i32 = arith.constant 0 : i32
    %c0_i32_0 = arith.constant 0 : i32
    return %arg0, %c0_i32 : i32, i32
  }
}

module attributes {stable_mosaic.version = 11 : i64} {
  func.func @_norm_kernel(%arg0: i32, %arg1: i32, %arg2: memref<8x256xf32, #tpu.memory_space<vmem>>, %arg3: memref<8x128xf32, #tpu.memory_space<vmem>>, %arg4: memref<8x128xf32, #tpu.memory_space<vmem>>, %arg5: memref<8x256xf32, #tpu.memory_space<vmem>>) attributes {dimension_semantics = [#tpu.dimension_semantics<parallel>, #tpu.dimension_semantics<parallel>], iteration_bounds = array<i64: 1, 1>, scalar_prefetch = 0 : i64, scratch_operands = 0 : i64, tpu.core_type = #tpu.core_type<tc>, window_params = [{transform_indices = @transform_0, window_bounds = array<i64: 8, 256>}, {transform_indices = @transform_1, window_bounds = array<i64: 8, 128>}, {transform_indices = @transform_2, window_bounds = array<i64: 8, 128>}, {transform_indices = @transform_3, window_bounds = array<i64: 8, 256>}]} {
    %c0 = arith.constant 0 : index
    %c0_0 = arith.constant 0 : index
    %0 = vector.load %arg3[%c0, %c0_0] : memref<8x128xf32, #tpu.memory_space<vmem>>, vector<8x128xf32>
    %c0_1 = arith.constant 0 : index
    %c0_2 = arith.constant 0 : index
    %1 = vector.load %arg4[%c0_1, %c0_2] : memref<8x128xf32, #tpu.memory_space<vmem>>, vector<8x128xf32>
    %c0_3 = arith.constant 0 : index
    %c0_4 = arith.constant 0 : index
    %2 = vector.load %arg2[%c0_3, %c0_4] : memref<8x256xf32, #tpu.memory_space<vmem>>, vector<8x128xf32>
    %3 = arith.mulf %2, %0 : vector<8x128xf32>
    %4 = arith.addf %3, %1 : vector<8x128xf32>
    %c0_5 = arith.constant 0 : index
    %c0_6 = arith.constant 0 : index
    %5 = vector.load %arg5[%c0_5, %c0_6] : memref<8x256xf32, #tpu.memory_space<vmem>>, vector<8x128xf32>
    tpu.vector_store %arg5[%c0_5, %c0_6], %4 {strides = array<i32>} : memref<8x256xf32, #tpu.memory_space<vmem>>, vector<8x128xf32>,
    %c0_7 = arith.constant 0 : index
    %c128 = arith.constant 128 : index
    %6 = vector.load %arg2[%c0_7, %c128] : memref<8x256xf32, #tpu.memory_space<vmem>>, vector<8x128xf32>
    %7 = arith.mulf %6, %0 : vector<8x128xf32>
    %8 = arith.addf %7, %1 : vector<8x128xf32>
    %c0_8 = arith.constant 0 : index
    %c128_9 = arith.constant 128 : index
    %9 = vector.load %arg5[%c0_8, %c128_9] : memref<8x256xf32, #tpu.memory_space<vmem>>, vector<8x128xf32>
    tpu.vector_store %arg5[%c0_8, %c128_9], %8 {strides = array<i32>} : memref<8x256xf32, #tpu.memory_space<vmem>>, vector<8x128xf32>,
    return
  }
  func.func @transform_0(%arg0: i32, %arg1: i32) -> (i32, i32) {
    %c0_i32 = arith.constant 0 : i32
    return %arg0, %arg1 : i32, i32
  }
  func.func @transform_1(%arg0: i32, %arg1: i32) -> (i32, i32) {
    %c0_i32 = arith.constant 0 : i32
    %c0_i32_0 = arith.constant 0 : i32
    return %arg0, %c0_i32 : i32, i32
  }
  func.func @transform_2(%arg0: i32, %arg1: i32) -> (i32, i32) {
    %c0_i32 = arith.constant 0 : i32
    %c0_i32_0 = arith.constant 0 : i32
    return %arg0, %c0_i32 : i32, i32
  }
  func.func @transform_3(%arg0: i32, %arg1: i32) -> (i32, i32) {
    %c0_i32 = arith.constant 0 : i32
    return %arg0, %arg1 : i32, i32
  }
}

</mosaic_0001>

<bundles_post_ra>
// kernel: mul.78
= control target key start
LH: loop header
LB: loop body
LE: loop exit
PB: predicated region body
PF: predicated region fallthrough
CT: control target
= control target key end

     0   :  { %s34_s0 = inlined_call_operand.vmem [shape: f32[8], index: 0, kind: input, shape index: {}]   ;;  %s35_s1 = inlined_call_operand.vmem [shape: f32[8], index: 1, kind: input, shape index: {}]   ;;  %s36_s2 = inlined_call_operand.vmem [shape: f32[8], index: 2, kind: output, shape index: {}]  }
   0x1   :  { %v3_v0 = vld [vmem:[%s34_s0] sm:$0x1] }
   0x2   :  { %v4_v1 = vld [vmem:[%s35_s1] sm:$0x1] }
   0x3   :  { %v7_v2 = vmul.f32 %v4_v1, %v3_v0 }
   0x5   :  { %9 = vst [vmem:[%s36_s2] sm:$0x1] %v7_v2 }

// kernel: switch_norm_3d.2
= control target key start
LH: loop header
LB: loop body
LE: loop exit
PB: predicated region body
PF: predicated region fallthrough
CT: control target
= control target key end

     0   :  { %s66_s0 = inlined_call_operand.vmem [shape: f32[8,256], index: 0, kind: input, shape index: {}]   ;;  %s67_s1 = inlined_call_operand.vmem [shape: f32[8,128], index: 1, kind: output, shape index: {0}]   ;;  %s68_s2 = inlined_call_operand.vmem [shape: f32[8,128], index: 2, kind: output, shape index: {1}]  }
   0x1   :  { %v16_v0 = vld [vmem:[%s66_s0] sm:$0xff]  ;;  %v20_v1 = vld [vmem:[%s66_s0 + $0x8] sm:$0xff] }
   0x2   :  { %v21_v2 = vadd.f32 %v20_v1, %v16_v0  ;;  %v18_v3 = vmul.f32 %v16_v0, %v16_v0  ;;  %v22_v4 = vmul.f32 %v20_v1, %v20_v1 }
   0x4   :  { %v23_v5 = vadd.f32 %v22_v4, %v18_v3  ;;  %26 = vst [vmem:[%s67_s1] sm:$0xff] %v21_v2 }
   0x6   :  { %29 = vst [vmem:[%s68_s2] sm:$0xff] %v23_v5 }

// kernel: switch_norm_3d.3
= control target key start
LH: loop header
LB: loop body
LE: loop exit
PB: predicated region body
PF: predicated region fallthrough
CT: control target
= control target key end

     0   :  { %s66_s0 = inlined_call_operand.vmem [shape: f32[8,256], index: 0, kind: input, shape index: {}]   ;;  %s67_s1 = inlined_call_operand.vmem [shape: f32[8,128], index: 1, kind: input, shape index: {}]   ;;  %s68_s2 = inlined_call_operand.vmem [shape: f32[8,128], index: 2, kind: input, shape index: {}]   ;;  %s69_s3 = inlined_call_operand.vmem [shape: f32[8,256], index: 3, kind: output, shape index: {}]  }
   0x1   :  { %v14_v0 = vld [vmem:[%s67_s1] sm:$0xff]  ;;  %v20_v4 = vld [vmem:[%s66_s0 + $0x8] sm:$0xff] }
   0x2   :  { %v15_v1 = vld [vmem:[%s68_s2] sm:$0xff]  ;;  %v21_v5 = vmul.f32 %v20_v4, %v14_v0 }
   0x3   :  { %v16_v2 = vld [vmem:[%s66_s0] sm:$0xff] }
   0x4   :  { %v17_v3 = vmul.f32 %v16_v2, %v14_v0  ;;  %v22_v7 = vadd.f32 %v21_v5, %v15_v1 }
   0x6   :  { %v18_v6 = vadd.f32 %v17_v3, %v15_v1  ;;  %23 = vst [vmem:[%s69_s3 + $0x8] sm:$0xff] %v22_v7 }
   0x8   :  { %19 = vst [vmem:[%s69_s3] sm:$0xff] %v18_v6 }

</bundles_post_ra>
